<compile_context>
chip_gen: v7x
topology: tpu7x:2x2x1
jax: 0.10.0
libtpu: 0.0.40
codegen_flags: <defaults>
</compile_context>

<pallas_src>
import math
import functools

import jax
import jax.numpy as jnp
from jax import lax
from jax.experimental import pallas as pl
from jax.experimental.pallas import tpu as pltpu

N_LAYERS = 8
LRELU_SLOPE = 0.2
NORM_EPS = 1e-12


def _mapping_kernel(z_ref, w_ref, b_ref, wavg_ref, out_ref, new_wavg_ref, *,
                    n_layers, w_avg_beta, truncation_psi):
    # ---- normalize(z): L2 along the latent axis ------------------------------
    z = z_ref[...].astype(jnp.float32)                        # [B, D]
    sumsq = jnp.sum(z * z, axis=1, keepdims=True)             # [B, 1]
    # rsqrt(max(sumsq, eps^2)) == 1/max(||z||, eps); EUP rsqrt keeps VALU free.
    inv_norm = lax.rsqrt(jnp.maximum(sumsq, NORM_EPS * NORM_EPS))
    x = z * inv_norm                                          # [B, D] f32

    # ---- 8 x (EqualizedLinear -> LeakyReLU), activation carried in vregs ----
    # w_ref: [L, D_in, D_out] bf16, equalized-lr scale already folded in.
    # b_ref: [L, 1, D] f32.
    for l in range(n_layers):                                 # static unroll (L=8)
        wl = w_ref[l]                                         # [D_in, D_out] bf16
        bl = b_ref[l].astype(jnp.float32)                     # [1, D]
        y = lax.dot_general(x.astype(jnp.bfloat16), wl,
                            dimension_numbers=(((1,), (0,)), ((), ())),
                            preferred_element_type=jnp.float32) + bl
        x = jnp.where(y > 0, y, LRELU_SLOPE * y)              # LeakyReLU(0.2)

    # ---- w_avg lerp + truncation trick ---------------------------------------
    # TODO(synk): for training-scale B on v7x, add a leading "parallel" batch
    # grid axis (TILE_B ~ 256-512) with a partial-sum finalize for this mean so
    # both TensorCores are used and the resident B*D set stays under 64 MiB VMEM.
    mean = jnp.mean(x, axis=0, keepdims=True)                 # [1, D]
    wavg = wavg_ref[...].astype(jnp.float32)                  # [1, D]
    new_wavg = (1.0 - w_avg_beta) * mean + w_avg_beta * wavg
    new_wavg_ref[...] = new_wavg.astype(new_wavg_ref.dtype)
    if truncation_psi != 1:                                   # static branch
        x = new_wavg + truncation_psi * (x - new_wavg)
    out_ref[...] = x.astype(out_ref.dtype)


def mapping_network(z, weights, biases, w_avg, *,
                    w_avg_beta=0.995, truncation_psi=1.0):
    """z: [B, D]; weights: [L, D_out, D_in] (native PyTorch nn.Linear layout);
    biases: [L, D]; w_avg: [D].
    Returns (w: [B, D] f32, new_w_avg: [D] f32)."""
    B, D = z.shape
    L = weights.shape[0]
    assert weights.shape == (L, D, D) and biases.shape == (L, D)

    # Pre-transpose to [L, D_in, D_out], fold the equalized-lr 1/sqrt(D) scale,
    # and cast to bf16.  In production, store the weights persistently in this
    # form so this prep is one-time/offline and the call moves half the bytes.
    scale = 1.0 / math.sqrt(D)
    w_prepped = jnp.transpose(weights.astype(jnp.float32) * scale,
                              (0, 2, 1)).astype(jnp.bfloat16)
    b_3d = biases.astype(jnp.float32).reshape(L, 1, D)
    wavg_2d = w_avg.astype(jnp.float32).reshape(1, D)

    kernel = functools.partial(_mapping_kernel,
                               n_layers=L,
                               w_avg_beta=float(w_avg_beta),
                               truncation_psi=float(truncation_psi))

    cost = pl.CostEstimate(
        flops=2 * B * D * D * L,
        transcendentals=B,  # one rsqrt per row
        bytes_accessed=L * D * D * 2 + L * D * 4 + 2 * B * D * 4 + 2 * D * 4 + D * 4,
    )

    vmem = pl.BlockSpec(memory_space=pltpu.MemorySpace.VMEM)
    out, new_wavg = pl.pallas_call(
        kernel,
        out_shape=(jax.ShapeDtypeStruct((B, D), jnp.float32),
                   jax.ShapeDtypeStruct((1, D), jnp.float32)),
        in_specs=[vmem, vmem, vmem, vmem],     # whole arrays resident in VMEM
        out_specs=(vmem, vmem),
        cost_estimate=cost,
    )(z.astype(jnp.float32), w_prepped, b_3d, wavg_2d)
    return out, new_wavg.reshape(D)


def _reference(z, weights, biases, w_avg, *, w_avg_beta, truncation_psi):
    """Pure-JAX f32 reference mirroring the PyTorch forward."""
    D = z.shape[1]
    x = z / jnp.maximum(jnp.linalg.norm(z, axis=1, keepdims=True), NORM_EPS)
    scale = 1.0 / math.sqrt(D)
    for l in range(weights.shape[0]):
        x = x @ (weights[l] * scale).T + biases[l]
        x = jnp.where(x > 0, x, LRELU_SLOPE * x)
    new_wavg = (1.0 - w_avg_beta) * x.mean(axis=0) + w_avg_beta * w_avg
    if truncation_psi != 1:
        x = new_wavg + truncation_psi * (x - new_wavg)
    return x, new_wavg


if __name__ == "__main__":
    # Small deterministic example (dim_latent shrunk to 128 for a tiny run).
    B, D = 8, 128
    key = jax.random.PRNGKey(0)
    kz, kw, kb = jax.random.split(key, 3)

    z = jax.random.normal(kz, (B, D), dtype=jnp.float32)
    # EqualizedLinear: weights ~ N(0, 1) (scaled at runtime), small biases so
    # the bias path is exercised.  Native PyTorch [L, D_out, D_in] layout here;
    # the wrapper pre-transposes/pre-scales/casts once (offline in production).
    weights = jax.random.normal(kw, (N_LAYERS, D, D), dtype=jnp.float32)
    biases = 0.01 * jax.random.normal(kb, (N_LAYERS, D), dtype=jnp.float32)
    w_avg = jnp.zeros((D,), dtype=jnp.float32)

    psi = 0.7  # exercise the truncation branch
    out, new_wavg = mapping_network(z, weights, biases, w_avg,
                                    w_avg_beta=0.995, truncation_psi=psi)
    out = jax.block_until_ready(out)
    new_wavg = jax.block_until_ready(new_wavg)

    ref_out, ref_wavg = _reference(z, weights, biases, w_avg,
                                   w_avg_beta=0.995, truncation_psi=psi)
    assert out.shape == (B, D) and new_wavg.shape == (D,)
    # bf16 matmul inputs vs. the f32 reference -> slightly relaxed tolerance.
    assert jnp.allclose(out, ref_out, atol=3e-2, rtol=3e-2)
    assert jnp.allclose(new_wavg, ref_wavg, atol=3e-2, rtol=3e-2)

    print("KERNEL_OK")
</pallas_src>

<mosaic_0001>
module attributes {stable_mosaic.version = 11 : i64} {
  func.func @_mapping_kernel(%arg0: memref<8x128xf32, #tpu.memory_space<vmem>>, %arg1: memref<8x128x128xbf16, #tpu.memory_space<vmem>>, %arg2: memref<8x1x128xf32, #tpu.memory_space<vmem>>, %arg3: memref<1x128xf32, #tpu.memory_space<vmem>>, %arg4: memref<8x128xf32, #tpu.memory_space<vmem>>, %arg5: memref<1x128xf32, #tpu.memory_space<vmem>>) attributes {dimension_semantics = [], scalar_prefetch = 0 : i64, scratch_operands = 0 : i64, tpu.core_type = #tpu.core_type<tc>} {
    %c0 = arith.constant 0 : index
    %c0_0 = arith.constant 0 : index
    %0 = vector.load %arg0[%c0, %c0_0] : memref<8x128xf32, #tpu.memory_space<vmem>>, vector<8x128xf32>
    %1 = arith.mulf %0, %0 : vector<8x128xf32>
    %cst = arith.constant dense<0.000000e+00> : vector<8xf32>
    %2 = vector.multi_reduction <add>, %1, %cst [1] : vector<8x128xf32> to vector<8xf32>
    %3 = vector.shape_cast %2 : vector<8xf32> to vector<8x1xf32>
    %cst_1 = arith.constant 1.000000e-24 : f32
    %4 = vector.broadcast %cst_1 : f32 to vector<8x1xf32>
    %5 = arith.maximumf %3, %4 : vector<8x1xf32>
    %6 = math.rsqrt %5 : vector<8x1xf32>
    %7 = vector.broadcast %6 : vector<8x1xf32> to vector<8x128xf32>
    %8 = arith.mulf %0, %7 : vector<8x128xf32>
    %c0_2 = arith.constant 0 : index
    %c0_3 = arith.constant 0 : index
    %c0_4 = arith.constant 0 : index
    %9 = vector.load %arg1[%c0_2, %c0_3, %c0_4] : memref<8x128x128xbf16, #tpu.memory_space<vmem>>, vector<1x128x128xbf16>
    %10 = vector.shape_cast %9 : vector<1x128x128xbf16> to vector<128x128xbf16>
    %c0_5 = arith.constant 0 : index
    %c0_6 = arith.constant 0 : index
    %c0_7 = arith.constant 0 : index
    %11 = vector.load %arg2[%c0_5, %c0_6, %c0_7] : memref<8x1x128xf32, #tpu.memory_space<vmem>>, vector<1x1x128xf32>
    %12 = vector.shape_cast %11 : vector<1x1x128xf32> to vector<1x128xf32>
    %13 = arith.truncf %8 : vector<8x128xf32> to vector<8x128xbf16>
    %cst_8 = arith.constant dense<0.000000e+00> : vector<8x128xf32>
    %14 = tpu.matmul %13, %10, %cst_8 {dimension_numbers = #tpu.dot_dimension_numbers<[1], [0], [0], [1], [0, 0, 1, 1], [], []>} : vector<8x128xbf16>, vector<128x128xbf16>, vector<8x128xf32> -> vector<8x128xf32>
    %15 = vector.broadcast %12 : vector<1x128xf32> to vector<8x128xf32>
    %16 = arith.addf %14, %15 : vector<8x128xf32>
    %cst_9 = arith.constant 0.000000e+00 : f32
    %17 = vector.broadcast %cst_9 : f32 to vector<8x128xf32>
    %18 = arith.cmpf ogt, %16, %17 : vector<8x128xf32>
    %cst_10 = arith.constant 2.000000e-01 : f32
    %19 = vector.broadcast %cst_10 : f32 to vector<8x128xf32>
    %20 = arith.mulf %19, %16 : vector<8x128xf32>
    %21 = arith.select %18, %16, %20 : vector<8x128xi1>, vector<8x128xf32>
    %c1 = arith.constant 1 : index
    %c0_11 = arith.constant 0 : index
    %c0_12 = arith.constant 0 : index
    %22 = vector.load %arg1[%c1, %c0_11, %c0_12] : memref<8x128x128xbf16, #tpu.memory_space<vmem>>, vector<1x128x128xbf16>
    %23 = vector.shape_cast %22 : vector<1x128x128xbf16> to vector<128x128xbf16>
    %c1_13 = arith.constant 1 : index
    %c0_14 = arith.constant 0 : index
    %c0_15 = arith.constant 0 : index
    %24 = vector.load %arg2[%c1_13, %c0_14, %c0_15] : memref<8x1x128xf32, #tpu.memory_space<vmem>>, vector<1x1x128xf32>
    %25 = vector.shape_cast %24 : vector<1x1x128xf32> to vector<1x128xf32>
    %26 = arith.truncf %21 : vector<8x128xf32> to vector<8x128xbf16>
    %cst_16 = arith.constant dense<0.000000e+00> : vector<8x128xf32>
    %27 = tpu.matmul %26, %23, %cst_16 {dimension_numbers = #tpu.dot_dimension_numbers<[1], [0], [0], [1], [0, 0, 1, 1], [], []>} : vector<8x128xbf16>, vector<128x128xbf16>, vector<8x128xf32> -> vector<8x128xf32>
    %28 = vector.broadcast %25 : vector<1x128xf32> to vector<8x128xf32>
    %29 = arith.addf %27, %28 : vector<8x128xf32>
    %cst_17 = arith.constant 0.000000e+00 : f32
    %30 = vector.broadcast %cst_17 : f32 to vector<8x128xf32>
    %31 = arith.cmpf ogt, %29, %30 : vector<8x128xf32>
    %cst_18 = arith.constant 2.000000e-01 : f32
    %32 = vector.broadcast %cst_18 : f32 to vector<8x128xf32>
    %33 = arith.mulf %32, %29 : vector<8x128xf32>
    %34 = arith.select %31, %29, %33 : vector<8x128xi1>, vector<8x128xf32>
    %c2 = arith.constant 2 : index
    %c0_19 = arith.constant 0 : index
    %c0_20 = arith.constant 0 : index
    %35 = vector.load %arg1[%c2, %c0_19, %c0_20] : memref<8x128x128xbf16, #tpu.memory_space<vmem>>, vector<1x128x128xbf16>
    %36 = vector.shape_cast %35 : vector<1x128x128xbf16> to vector<128x128xbf16>
    %c2_21 = arith.constant 2 : index
    %c0_22 = arith.constant 0 : index
    %c0_23 = arith.constant 0 : index
    %37 = vector.load %arg2[%c2_21, %c0_22, %c0_23] : memref<8x1x128xf32, #tpu.memory_space<vmem>>, vector<1x1x128xf32>
    %38 = vector.shape_cast %37 : vector<1x1x128xf32> to vector<1x128xf32>
    %39 = arith.truncf %34 : vector<8x128xf32> to vector<8x128xbf16>
    %cst_24 = arith.constant dense<0.000000e+00> : vector<8x128xf32>
    %40 = tpu.matmul %39, %36, %cst_24 {dimension_numbers = #tpu.dot_dimension_numbers<[1], [0], [0], [1], [0, 0, 1, 1], [], []>} : vector<8x128xbf16>, vector<128x128xbf16>, vector<8x128xf32> -> vector<8x128xf32>
    %41 = vector.broadcast %38 : vector<1x128xf32> to vector<8x128xf32>
    %42 = arith.addf %40, %41 : vector<8x128xf32>
    %cst_25 = arith.constant 0.000000e+00 : f32
    %43 = vector.broadcast %cst_25 : f32 to vector<8x128xf32>
    %44 = arith.cmpf ogt, %42, %43 : vector<8x128xf32>
    %cst_26 = arith.constant 2.000000e-01 : f32
    %45 = vector.broadcast %cst_26 : f32 to vector<8x128xf32>
    %46 = arith.mulf %45, %42 : vector<8x128xf32>
    %47 = arith.select %44, %42, %46 : vector<8x128xi1>, vector<8x128xf32>
    %c3 = arith.constant 3 : index
    %c0_27 = arith.constant 0 : index
    %c0_28 = arith.constant 0 : index
    %48 = vector.load %arg1[%c3, %c0_27, %c0_28] : memref<8x128x128xbf16, #tpu.memory_space<vmem>>, vector<1x128x128xbf16>
    %49 = vector.shape_cast %48 : vector<1x128x128xbf16> to vector<128x128xbf16>
    %c3_29 = arith.constant 3 : index
    %c0_30 = arith.constant 0 : index
    %c0_31 = arith.constant 0 : index
    %50 = vector.load %arg2[%c3_29, %c0_30, %c0_31] : memref<8x1x128xf32, #tpu.memory_space<vmem>>, vector<1x1x128xf32>
    %51 = vector.shape_cast %50 : vector<1x1x128xf32> to vector<1x128xf32>
    %52 = arith.truncf %47 : vector<8x128xf32> to vector<8x128xbf16>
    %cst_32 = arith.constant dense<0.000000e+00> : vector<8x128xf32>
    %53 = tpu.matmul %52, %49, %cst_32 {dimension_numbers = #tpu.dot_dimension_numbers<[1], [0], [0], [1], [0, 0, 1, 1], [], []>} : vector<8x128xbf16>, vector<128x128xbf16>, vector<8x128xf32> -> vector<8x128xf32>
    %54 = vector.broadcast %51 : vector<1x128xf32> to vector<8x128xf32>
    %55 = arith.addf %53, %54 : vector<8x128xf32>
    %cst_33 = arith.constant 0.000000e+00 : f32
    %56 = vector.broadcast %cst_33 : f32 to vector<8x128xf32>
    %57 = arith.cmpf ogt, %55, %56 : vector<8x128xf32>
    %cst_34 = arith.constant 2.000000e-01 : f32
    %58 = vector.broadcast %cst_34 : f32 to vector<8x128xf32>
    %59 = arith.mulf %58, %55 : vector<8x128xf32>
    %60 = arith.select %57, %55, %59 : vector<8x128xi1>, vector<8x128xf32>
    %c4 = arith.constant 4 : index
    %c0_35 = arith.constant 0 : index
    %c0_36 = arith.constant 0 : index
    %61 = vector.load %arg1[%c4, %c0_35, %c0_36] : memref<8x128x128xbf16, #tpu.memory_space<vmem>>, vector<1x128x128xbf16>
    %62 = vector.shape_cast %61 : vector<1x128x128xbf16> to vector<128x128xbf16>
    %c4_37 = arith.constant 4 : index
    %c0_38 = arith.constant 0 : index
    %c0_39 = arith.constant 0 : index
    %63 = vector.load %arg2[%c4_37, %c0_38, %c0_39] : memref<8x1x128xf32, #tpu.memory_space<vmem>>, vector<1x1x128xf32>
    %64 = vector.shape_cast %63 : vector<1x1x128xf32> to vector<1x128xf32>
    %65 = arith.truncf %60 : vector<8x128xf32> to vector<8x128xbf16>
    %cst_40 = arith.constant dense<0.000000e+00> : vector<8x128xf32>
    %66 = tpu.matmul %65, %62, %cst_40 {dimension_numbers = #tpu.dot_dimension_numbers<[1], [0], [0], [1], [0, 0, 1, 1], [], []>} : vector<8x128xbf16>, vector<128x128xbf16>, vector<8x128xf32> -> vector<8x128xf32>
    %67 = vector.broadcast %64 : vector<1x128xf32> to vector<8x128xf32>
    %68 = arith.addf %66, %67 : vector<8x128xf32>
    %cst_41 = arith.constant 0.000000e+00 : f32
    %69 = vector.broadcast %cst_41 : f32 to vector<8x128xf32>
    %70 = arith.cmpf ogt, %68, %69 : vector<8x128xf32>
    %cst_42 = arith.constant 2.000000e-01 : f32
    %71 = vector.broadcast %cst_42 : f32 to vector<8x128xf32>
    %72 = arith.mulf %71, %68 : vector<8x128xf32>
    %73 = arith.select %70, %68, %72 : vector<8x128xi1>, vector<8x128xf32>
    %c5 = arith.constant 5 : index
    %c0_43 = arith.constant 0 : index
    %c0_44 = arith.constant 0 : index
    %74 = vector.load %arg1[%c5, %c0_43, %c0_44] : memref<8x128x128xbf16, #tpu.memory_space<vmem>>, vector<1x128x128xbf16>
    %75 = vector.shape_cast %74 : vector<1x128x128xbf16> to vector<128x128xbf16>
    %c5_45 = arith.constant 5 : index
    %c0_46 = arith.constant 0 : index
    %c0_47 = arith.constant 0 : index
    %76 = vector.load %arg2[%c5_45, %c0_46, %c0_47] : memref<8x1x128xf32, #tpu.memory_space<vmem>>, vector<1x1x128xf32>
    %77 = vector.shape_cast %76 : vector<1x1x128xf32> to vector<1x128xf32>
    %78 = arith.truncf %73 : vector<8x128xf32> to vector<8x128xbf16>
    %cst_48 = arith.constant dense<0.000000e+00> : vector<8x128xf32>
    %79 = tpu.matmul %78, %75, %cst_48 {dimension_numbers = #tpu.dot_dimension_numbers<[1], [0], [0], [1], [0, 0, 1, 1], [], []>} : vector<8x128xbf16>, vector<128x128xbf16>, vector<8x128xf32> -> vector<8x128xf32>
    %80 = vector.broadcast %77 : vector<1x128xf32> to vector<8x128xf32>
    %81 = arith.addf %79, %80 : vector<8x128xf32>
    %cst_49 = arith.constant 0.000000e+00 : f32
    %82 = vector.broadcast %cst_49 : f32 to vector<8x128xf32>
    %83 = arith.cmpf ogt, %81, %82 : vector<8x128xf32>
    %cst_50 = arith.constant 2.000000e-01 : f32
    %84 = vector.broadcast %cst_50 : f32 to vector<8x128xf32>
    %85 = arith.mulf %84, %81 : vector<8x128xf32>
    %86 = arith.select %83, %81, %85 : vector<8x128xi1>, vector<8x128xf32>
    %c6 = arith.constant 6 : index
    %c0_51 = arith.constant 0 : index
    %c0_52 = arith.constant 0 : index
    %87 = vector.load %arg1[%c6, %c0_51, %c0_52] : memref<8x128x128xbf16, #tpu.memory_space<vmem>>, vector<1x128x128xbf16>
    %88 = vector.shape_cast %87 : vector<1x128x128xbf16> to vector<128x128xbf16>
    %c6_53 = arith.constant 6 : index
    %c0_54 = arith.constant 0 : index
    %c0_55 = arith.constant 0 : index
    %89 = vector.load %arg2[%c6_53, %c0_54, %c0_55] : memref<8x1x128xf32, #tpu.memory_space<vmem>>, vector<1x1x128xf32>
    %90 = vector.shape_cast %89 : vector<1x1x128xf32> to vector<1x128xf32>
    %91 = arith.truncf %86 : vector<8x128xf32> to vector<8x128xbf16>
    %cst_56 = arith.constant dense<0.000000e+00> : vector<8x128xf32>
    %92 = tpu.matmul %91, %88, %cst_56 {dimension_numbers = #tpu.dot_dimension_numbers<[1], [0], [0], [1], [0, 0, 1, 1], [], []>} : vector<8x128xbf16>, vector<128x128xbf16>, vector<8x128xf32> -> vector<8x128xf32>
    %93 = vector.broadcast %90 : vector<1x128xf32> to vector<8x128xf32>
    %94 = arith.addf %92, %93 : vector<8x128xf32>
    %cst_57 = arith.constant 0.000000e+00 : f32
    %95 = vector.broadcast %cst_57 : f32 to vector<8x128xf32>
    %96 = arith.cmpf ogt, %94, %95 : vector<8x128xf32>
    %cst_58 = arith.constant 2.000000e-01 : f32
    %97 = vector.broadcast %cst_58 : f32 to vector<8x128xf32>
    %98 = arith.mulf %97, %94 : vector<8x128xf32>
    %99 = arith.select %96, %94, %98 : vector<8x128xi1>, vector<8x128xf32>
    %c7 = arith.constant 7 : index
    %c0_59 = arith.constant 0 : index
    %c0_60 = arith.constant 0 : index
    %100 = vector.load %arg1[%c7, %c0_59, %c0_60] : memref<8x128x128xbf16, #tpu.memory_space<vmem>>, vector<1x128x128xbf16>
    %101 = vector.shape_cast %100 : vector<1x128x128xbf16> to vector<128x128xbf16>
    %c7_61 = arith.constant 7 : index
    %c0_62 = arith.constant 0 : index
    %c0_63 = arith.constant 0 : index
    %102 = vector.load %arg2[%c7_61, %c0_62, %c0_63] : memref<8x1x128xf32, #tpu.memory_space<vmem>>, vector<1x1x128xf32>
    %103 = vector.shape_cast %102 : vector<1x1x128xf32> to vector<1x128xf32>
    %104 = arith.truncf %99 : vector<8x128xf32> to vector<8x128xbf16>
    %cst_64 = arith.constant dense<0.000000e+00> : vector<8x128xf32>
    %105 = tpu.matmul %104, %101, %cst_64 {dimension_numbers = #tpu.dot_dimension_numbers<[1], [0], [0], [1], [0, 0, 1, 1], [], []>} : vector<8x128xbf16>, vector<128x128xbf16>, vector<8x128xf32> -> vector<8x128xf32>
    %106 = vector.broadcast %103 : vector<1x128xf32> to vector<8x128xf32>
    %107 = arith.addf %105, %106 : vector<8x128xf32>
    %cst_65 = arith.constant 0.000000e+00 : f32
    %108 = vector.broadcast %cst_65 : f32 to vector<8x128xf32>
    %109 = arith.cmpf ogt, %107, %108 : vector<8x128xf32>
    %cst_66 = arith.constant 2.000000e-01 : f32
    %110 = vector.broadcast %cst_66 : f32 to vector<8x128xf32>
    %111 = arith.mulf %110, %107 : vector<8x128xf32>
    %112 = arith.select %109, %107, %111 : vector<8x128xi1>, vector<8x128xf32>
    %cst_67 = arith.constant dense<0.000000e+00> : vector<128xf32>
    %113 = vector.multi_reduction <add>, %112, %cst_67 [0] : vector<8x128xf32> to vector<128xf32>
    %114 = vector.shape_cast %113 : vector<128xf32> to vector<1x128xf32>
    %cst_68 = arith.constant 8.000000e+00 : f32
    %115 = vector.broadcast %cst_68 : f32 to vector<1x128xf32>
    %116 = arith.divf %114, %115 : vector<1x128xf32>
    %c0_69 = arith.constant 0 : index
    %c0_70 = arith.constant 0 : index
    %117 = vector.load %arg3[%c0_69, %c0_70] : memref<1x128xf32, #tpu.memory_space<vmem>>, vector<1x128xf32>
    %cst_71 = arith.constant 5.000000e-03 : f32
    %118 = vector.broadcast %cst_71 : f32 to vector<1x128xf32>
    %119 = arith.mulf %118, %116 : vector<1x128xf32>
    %cst_72 = arith.constant 9.950000e-01 : f32
    %120 = vector.broadcast %cst_72 : f32 to vector<1x128xf32>
    %121 = arith.mulf %120, %117 : vector<1x128xf32>
    %122 = arith.addf %119, %121 : vector<1x128xf32>
    %c0_73 = arith.constant 0 : index
    %c0_74 = arith.constant 0 : index
    %123 = vector.load %arg5[%c0_73, %c0_74] : memref<1x128xf32, #tpu.memory_space<vmem>>, vector<1x128xf32>
    tpu.vector_store %arg5[%c0_73, %c0_74], %122 {strides = array<i32>} : memref<1x128xf32, #tpu.memory_space<vmem>>, vector<1x128xf32>,
    %124 = vector.broadcast %122 : vector<1x128xf32> to vector<8x128xf32>
    %125 = arith.subf %112, %124 : vector<8x128xf32>
    %cst_75 = arith.constant 0.699999988 : f32
    %126 = vector.broadcast %cst_75 : f32 to vector<8x128xf32>
    %127 = arith.mulf %126, %125 : vector<8x128xf32>
    %128 = vector.broadcast %122 : vector<1x128xf32> to vector<8x128xf32>
    %129 = arith.addf %128, %127 : vector<8x128xf32>
    %c0_76 = arith.constant 0 : index
    %c0_77 = arith.constant 0 : index
    %130 = vector.load %arg4[%c0_76, %c0_77] : memref<8x128xf32, #tpu.memory_space<vmem>>, vector<8x128xf32>
    tpu.vector_store %arg4[%c0_76, %c0_77], %129 {strides = array<i32>} : memref<8x128xf32, #tpu.memory_space<vmem>>, vector<8x128xf32>,
    return
  }
}

</mosaic_0001>

<bundles_post_ra>
// kernel: tpu_custom_call.1
= control target key start
LH: loop header
LB: loop body
LE: loop exit
PB: predicated region body
PF: predicated region fallthrough
CT: control target
= control target key end

     0   :  { %11 = vsyncpa [#allocation3], 0  ;;  %s1736_s0 = inlined_call_operand.hbm [shape: f32[8,128], index: 0, kind: input, shape index: {}]   ;;  %s1737_s1 = inlined_call_operand.hbm [shape: bf16[8,128,128], index: 1, kind: input, shape index: {}]   ;;  %s1738_s2 = inlined_call_operand.hbm [shape: f32[8,1,128], index: 2, kind: input, shape index: {}]   ;;  %s1739_s3 = inlined_call_operand.vmem [shape: f32[1,128], index: 3, kind: input, shape index: {}]   ;;  %s1740_s4 = inlined_call_operand.hbm [shape: f32[8,128], index: 4, kind: output, shape index: {0}]   ;;  %s1741_s5 = inlined_call_operand.hbm [shape: f32[1,128], index: 5, kind: output, shape index: {1}]  }
   0x1   :  { %12 = vsyncpa [#allocation6], 0 }
   0x2   :  { %13 = vsyncpa [#allocation4], 0 }
   0x3   :  { %14 = vsyncpa [#allocation10], 0  ;;  %s1552_s18 = smov [#allocation5]   ;;  %s1434_s22 = scalar_lea.hbm %s1737_s1, 8192 }
   0x4   :  { %s30_s19 = sshll.u32 %s1552_s18, 4  ;;  %p1435_p0 = scmp.ne.s32.totalorder %s1737_s1, %s1434_s22  ;;  %s31_s19 = int_to_ptr.vmem [resolvable:$true] %s30_s19 }
   0x5   :  { %p1438_p1 = scmp.lt.u32.totalorder %s1434_s22, %s1737_s1 }
   0x7   :  { %p1440_p2 = pnand %p1438_p1, %p1435_p0 }
   0x9   :  { %1443 = shalt.err (!%p1440_p2)
}
   0xa   :  { %s1444_s27 = scalar_lea.vmem %s31_s19, 8192  ;;  %p1449_p4 = scmp.lt.s32.totalorder %s31_s19, %s31_s19 }
   0xb   :  { %p1445_p3 = scmp.ne.s32.totalorder %s31_s19, %s1444_s27  ;;  %p1450_p5 = scmp.lt.s32.totalorder %s1444_s27, %s1444_s27 }
   0xd   :  { %p1451_p6 = por %p1450_p5, %p1449_p4 }
   0xf   :  { %p1452_p7 = pnand %p1451_p6, %p1445_p3 }
  0x11   :  { %1455 = shalt.err (!%p1452_p7)
}
  0x12   :  { %s1553_s28 = smov 64   ;;  %s1554_s29 = smov 4  }
  0x13   :  { %36 = dma.hbm_to_vmem [thread:$0]  %s1737_s1, 8192, %s31_s19, [#allocation6], %s1553_s28, %s1553_s28, %s1554_s29  }
  0x14   :  { %s1555_s7 = smov [#allocation2]   ;;  %s1556_s9 = smov [#allocation7]  }
  0x15   :  { %s21_s8 = sshll.u32 %s1555_s7, 4  ;;  %s42_s10 = sshll.u32 %s1556_s9, 4  ;;  %s22_s8 = int_to_ptr.vmem [resolvable:$true] %s21_s8  ;;  %s43_s10 = int_to_ptr.vmem [resolvable:$true] %s42_s10 }
  0x16   :  { %s1456_s13 = scalar_lea.hbm %s1736_s0, 128 }
  0x17   :  { %p1457_p8 = scmp.ne.s32.totalorder %s1736_s0, %s1456_s13  ;;  %p1460_p9 = scmp.lt.u32.totalorder %s1456_s13, %s1736_s0 }
  0x19   :  { %p1462_p10 = pnand %p1460_p9, %p1457_p8 }
  0x1b   :  { %1465 = shalt.err (!%p1462_p10)
}
  0x1c   :  { %s1466_s1 = scalar_lea.vmem %s22_s8, 128  ;;  %p1471_p12 = scmp.lt.s32.totalorder %s22_s8, %s22_s8 }
  0x1d   :  { %p1467_p11 = scmp.ne.s32.totalorder %s22_s8, %s1466_s1  ;;  %p1472_p13 = scmp.lt.s32.totalorder %s1466_s1, %s1466_s1 }
  0x1f   :  { %p1473_p0 = por %p1472_p13, %p1471_p12 }
  0x21   :  { %p1474_p1 = pnand %p1473_p0, %p1467_p11 }
  0x23   :  { %1477 = shalt.err (!%p1474_p1)
}
  0x24   :  { %24 = dma.hbm_to_vmem [thread:$0]  %s1736_s0, 128, %s22_s8, [#allocation3]  }
  0x25   :  { %s1478_s22 = scalar_lea.hbm %s1738_s2, 128 }
  0x26   :  { %p1479_p2 = scmp.ne.s32.totalorder %s1738_s2, %s1478_s22  ;;  %p1482_p3 = scmp.lt.u32.totalorder %s1478_s22, %s1738_s2 }
  0x28   :  { %p1484_p4 = pnand %p1482_p3, %p1479_p2 }
  0x2a   :  { %1487 = shalt.err (!%p1484_p4)
}
  0x2b   :  { %s1488_s27 = scalar_lea.vmem %s43_s10, 128  ;;  %p1493_p6 = scmp.lt.s32.totalorder %s43_s10, %s43_s10 }
  0x2c   :  { %p1489_p5 = scmp.ne.s32.totalorder %s43_s10, %s1488_s27  ;;  %p1494_p7 = scmp.lt.s32.totalorder %s1488_s27, %s1488_s27 }
  0x2e   :  { %p1495_p8 = por %p1494_p7, %p1493_p6 }
  0x30   :  { %p1496_p9 = pnand %p1495_p8, %p1489_p5 }
  0x32   :  { %1499 = shalt.err (!%p1496_p9)
}
  0x33   :  { %s1557_s0 = smov 16   ;;  %s1558_s28 = smov 1  }
  0x34   :  { %48 = dma.hbm_to_vmem [thread:$0]  %s1738_s2, 128, %s43_s10, [#allocation6], %s1557_s0, %s1557_s0, %s1558_s28  }
  0x35   :  { %1544 = dma.done.wait [#allocation3], 128  }
  0x36   :  { %1545 = vsyncadd [#allocation3], 4294967168 }
  0x37   :  { %1546 = dma.done.wait [#allocation6], 8320  }
  0x38   :  { %1547 = vsyncadd [#allocation6], 4294958976  ;;  %v1559_v0 = vmov 0.0   ;;  %v61_v1 = vld [vmem:[#allocation2] sm:$0xff]  ;;  %v1368_v3 = vld [vmem:[#allocation5] sm:$0xff]   ;;  %vm1560_vm0 = vmmov 0  }
  0x39   :  { %1197 = vmatprep.subr.bf16.mxu0 %v1559_v0  ;;  %1217 = vmatprep.subr.bf16.mxu1 %v1559_v0  ;;  %v62_v2 = vmul.f32 %v61_v1, %v61_v1  ;;  %v1369_v4 = vld [vmem:[#allocation5 + $0x8] sm:$0xff]   ;;  %v1370_v5 = vld [vmem:[#allocation5 + $0x10] sm:$0xff]   ;;  %v1371_v6 = vld [vmem:[#allocation5 + $0x18] sm:$0xff]   ;;  %s1561_s7 = smov [#allocation9]  }
  0x3a   :  { %1198 = vmatpush3.bf16.msra.mxu0 %v1368_v3  ;;  %v1372_v7 = vld [vmem:[#allocation5 + $0x20] sm:$0xff]   ;;  %v1373_v8 = vld [vmem:[#allocation5 + $0x28] sm:$0xff]   ;;  %1213 = vmatprep.mubr.msk.bf16.mxu0 %vm1560_vm0, %v1559_v0  ;;  %v1374_v9 = vld [vmem:[#allocation5 + $0x30] sm:$0xff]   ;;  %s1039_s8 = sshll.u32 %s1561_s7, 4  ;;  %s1040_s8 = int_to_ptr.vmem [resolvable:$true] %s1039_s8 }
  0x3b   :  { %63 = vadd.xlane.f32.xlu0 %v62_v2  ;;  %1199 = vmatprep.subr.bf16.mxu0 %v1559_v0  ;;  %v1375_v10 = vld [vmem:[#allocation5 + $0x38] sm:$0xff]   ;;  %v1376_v11 = vld [vmem:[#allocation5 + $0x40] sm:$0xff]   ;;  %v1377_v12 = vld [vmem:[#allocation5 + $0x48] sm:$0xff]   ;;  %s1500_s9 = scalar_lea.vmem %s1040_s8, 16  ;;  %s1504_s10 = scalar_lea.vmem %s1040_s8, 32 }
  0x3c   :  { %1233 = vmatprep.mubr.msk.bf16.mxu1 %vm1560_vm0, %v1559_v0  ;;  %1218 = vmatpush3.bf16.msra.mxu1 %v1376_v11  ;;  %v1378_v13 = vld [vmem:[#allocation5 + $0x50] sm:$0xff]   ;;  %v1379_v14 = vld [vmem:[#allocation5 + $0x58] sm:$0xff]   ;;  %v1380_v15 = vld [vmem:[#allocation5 + $0x60] sm:$0xff]   ;;  %p1501_p10 = scmp.ne.s32.totalorder %s1040_s8, %s1500_s9  ;;  %p1505_p11 = scmp.lt.s32.totalorder %s1040_s8, %s1040_s8 }
  0x3d   :  { %1219 = vmatprep.subr.bf16.mxu1 %v1559_v0  ;;  %v1381_v16 = vld [vmem:[#allocation5 + $0x68] sm:$0xff]   ;;  %v1382_v22 = vld [vmem:[#allocation5 + $0x70] sm:$0xff]   ;;  %v1383_v23 = vld [vmem:[#allocation5 + $0x78] sm:$0xff]   ;;  %p1506_p12 = scmp.lt.s32.totalorder %s1504_s10, %s1500_s9 }
  0x3e   :  { %1200 = vmatpush3.bf16.msra.mxu0 %v1369_v4  ;;  %v1384_v24 = vld [vmem:[#allocation5 + $0x80] sm:$0xff]   ;;  %v1385_v25 = vld [vmem:[#allocation5 + $0x88] sm:$0xff]   ;;  %v1386_v26 = vld [vmem:[#allocation5 + $0x90] sm:$0xff]  }
  0x3f   :  { %1201 = vmatprep.subr.bf16.mxu0 %v1559_v0  ;;  %v1387_v27 = vld [vmem:[#allocation5 + $0x98] sm:$0xff]   ;;  %v1388_v28 = vld [vmem:[#allocation5 + $0xa0] sm:$0xff]   ;;  %v1389_v29 = vld [vmem:[#allocation5 + $0xa8] sm:$0xff]   ;;  %p1507_p13 = por %p1506_p12, %p1505_p11 }
  0x40   :  { %1220 = vmatpush3.bf16.msra.mxu1 %v1377_v12  ;;  %v1053_v30 = vld [vmem:[#allocation7] ss:$0 sm:$0xff]  ;;  %v1390_v39 = vld [vmem:[#allocation5 + $0xb0] sm:$0xff]   ;;  %v1391_v40 = vld [vmem:[#allocation5 + $0xb8] sm:$0xff]  }
  0x41   :  { %1221 = vmatprep.subr.bf16.mxu1 %v1559_v0  ;;  %v1392_v41 = vld [vmem:[#allocation5 + $0xc0] sm:$0xff]   ;;  %v1393_v42 = vld [vmem:[#allocation5 + $0xc8] sm:$0xff]   ;;  %v1394_v43 = vld [vmem:[#allocation5 + $0xd0] sm:$0xff]   ;;  %p1508_p0 = pnand %p1507_p13, %p1501_p10 }
  0x42   :  { %1202 = vmatpush3.bf16.msra.mxu0 %v1370_v5  ;;  %v1395_v44 = vld [vmem:[#allocation5 + $0xd8] sm:$0xff]   ;;  %v1396_v45 = vld [vmem:[#allocation5 + $0xe0] sm:$0xff]   ;;  %v1397_v46 = vld [vmem:[#allocation5 + $0xe8] sm:$0xff]  }
  0x43   :  { %1203 = vmatprep.subr.bf16.mxu0 %v1559_v0  ;;  %v1062_v47 = vld [vmem:[#allocation7 + $0x1] ss:$0 sm:$0xff]  ;;  %v1398_v56 = vld [vmem:[#allocation5 + $0xf0] sm:$0xff]   ;;  %v1399_v57 = vld [vmem:[#allocation5 + $0xf8] sm:$0xff]  }
  0x44   :  { %1222 = vmatpush3.bf16.msra.mxu1 %v1378_v13  ;;  %v1400_v58 = vld [vmem:[#allocation5 + $0x100] sm:$0xff]   ;;  %v1401_v59 = vld [vmem:[#allocation5 + $0x108] sm:$0xff]   ;;  %v1402_v60 = vld [vmem:[#allocation5 + $0x110] sm:$0xff]  }
  0x45   :  { %1223 = vmatprep.subr.bf16.mxu1 %v1559_v0  ;;  %v1403_v61 = vld [vmem:[#allocation5 + $0x118] sm:$0xff]   ;;  %v1404_v62 = vld [vmem:[#allocation5 + $0x120] sm:$0xff]   ;;  %v1405_v63 = vld [vmem:[#allocation5 + $0x128] sm:$0xff]  }
  0x46   :  { %1204 = vmatpush3.bf16.msra.mxu0 %v1371_v6  ;;  %v1407_v11 = vld [vmem:[#allocation5 + $0x138] sm:$0xff]   ;;  %v1408_v12 = vld [vmem:[#allocation5 + $0x140] sm:$0xff]   ;;  %v1409_v13 = vld [vmem:[#allocation5 + $0x148] sm:$0xff]  }
  0x47   :  { %1205 = vmatprep.subr.bf16.mxu0 %v1559_v0 }
  0x48   :  { %1224 = vmatpush3.bf16.msra.mxu1 %v1379_v14  ;;  %v1410_v14 = vld [vmem:[#allocation5 + $0x150] sm:$0xff]  }
  0x49   :  { %1225 = vmatprep.subr.bf16.mxu1 %v1559_v0 }
  0x4a   :  { %1206 = vmatpush3.bf16.msra.mxu0 %v1372_v7 }
  0x4b   :  { %1207 = vmatprep.subr.bf16.mxu0 %v1559_v0 }
  0x4c   :  { %1226 = vmatpush3.bf16.msra.mxu1 %v1380_v15  ;;  %v1411_v15 = vld [vmem:[#allocation5 + $0x158] sm:$0xff]  }
  0x4d   :  { %1227 = vmatprep.subr.bf16.mxu1 %v1559_v0 }
  0x4e   :  { %1208 = vmatpush3.bf16.msra.mxu0 %v1373_v8 }
  0x4f   :  { %1209 = vmatprep.subr.bf16.mxu0 %v1559_v0 }
  0x50   :  { %1228 = vmatpush3.bf16.msra.mxu1 %v1381_v16  ;;  %v1412_v16 = vld [vmem:[#allocation5 + $0x160] sm:$0xff]  }
  0x51   :  { %1229 = vmatprep.subr.bf16.mxu1 %v1559_v0 }
  0x52   :  { %1210 = vmatpush3.bf16.msra.mxu0 %v1374_v9 }
  0x53   :  { %1211 = vmatprep.subr.bf16.mxu0 %v1559_v0 }
  0x54   :  { %1230 = vmatpush3.bf16.msra.mxu1 %v1382_v22 }
  0x55   :  { %1231 = vmatprep.subr.bf16.mxu1 %v1559_v0 }
  0x56   :  { %1212 = vmatpush3.bf16.msra.mxu0 %v1375_v10  ;;  %v1406_v10 = vld [vmem:[#allocation5 + $0x130] sm:$0xff]  }
  0x57   :  { %1237 = vmatprep.subr.bf16.mxu0 %v1559_v0 }
  0x58   :  { %1232 = vmatpush3.bf16.msra.mxu1 %v1383_v23 }
  0x59   :  { %1257 = vmatprep.subr.bf16.mxu1 %v1559_v0 }
  0xc8   :  { %v64_v17 = vpop.xlane.xlu0 %63 }
  0xc9   :  { %v65_v18 = vmax.f32 %v64_v17, 1e-24  ;;  %v1413_v17 = vld [vmem:[#allocation5 + $0x168] sm:$0xff]  }
  0xcb   :  { %1432 = vrsqrt.f32 %v65_v18  ;;  %v1080_v18 = vld [vmem:[#allocation7 + $0x3] ss:$0 sm:$0xff] }
  0xd5   :  { %v1433_v19 = vpop.eup %1432 }
  0xd6   :  { %v67_v20 = vmul.f32 %v1433_v19, %v61_v1  ;;  %v1071_v1 = vld [vmem:[#allocation7 + $0x2] ss:$0 sm:$0xff] }
  0xd8   :  { %v85_v21 = vpack.c.bf16 %v67_v20, %v67_v20 }
  0xda   :  { %1214 = vmatmul.mubr.bf16.vlgmr.msra.gmra.mrb[0].mxu0 %v85_v21 }
  0xdb   :  { %1253 = vmatprep.mubr.msk.bf16.mxu0 %vm1560_vm0, %v1559_v0  ;;  %1238 = vmatpush3.bf16.msra.mxu0 %v1384_v24 }
  0xdc   :  { %1239 = vmatprep.subr.bf16.mxu0 %v1559_v0 }
  0xdf   :  { %1240 = vmatpush3.bf16.msra.mxu0 %v1385_v25 }
  0xe0   :  { %1241 = vmatprep.subr.bf16.mxu0 %v1559_v0 }
  0xe3   :  { %1242 = vmatpush3.bf16.msra.mxu0 %v1386_v26 }
  0xe4   :  { %1243 = vmatprep.subr.bf16.mxu0 %v1559_v0 }
  0xe7   :  { %1244 = vmatpush3.bf16.msra.mxu0 %v1387_v27  ;;  %v1414_v27 = vld [vmem:[#allocation5 + $0x170] sm:$0xff]  }
  0xe8   :  { %1245 = vmatprep.subr.bf16.mxu0 %v1559_v0 }
  0xeb   :  { %1246 = vmatpush3.bf16.msra.mxu0 %v1388_v28  ;;  %v1415_v28 = vld [vmem:[#allocation5 + $0x178] sm:$0xff]  }
  0xec   :  { %1247 = vmatprep.subr.bf16.mxu0 %v1559_v0 }
  0xef   :  { %1248 = vmatpush3.bf16.msra.mxu0 %v1389_v29  ;;  %v1416_v29 = vld [vmem:[#allocation5 + $0x180] sm:$0xff]  }
  0xf0   :  { %1249 = vmatprep.subr.bf16.mxu0 %v1559_v0 }
  0xf3   :  { %1250 = vmatpush3.bf16.msra.mxu0 %v1390_v39 }
  0xf4   :  { %1251 = vmatprep.subr.bf16.mxu0 %v1559_v0 }
  0xf7   :  { %1252 = vmatpush3.bf16.msra.mxu0 %v1391_v40 }
  0xf8   :  { %1277 = vmatprep.subr.bf16.mxu0 %v1559_v0 }
 0x1ad   :  { %v174_v31 = vpop.f32.mrb[0].mxu0 }
 0x1ae   :  { %v175_v32 = vadd.f32 %v1053_v30, %v174_v31  ;;  %v1215_v33 = vpop.f32.mrb[1].mxu0  ;;  %v1417_v30 = vld [vmem:[#allocation5 + $0x188] sm:$0xff]   ;;  %v1418_v31 = vld [vmem:[#allocation5 + $0x190] sm:$0xff]  }
 0x1af   :  { %v177_v34 = vpop.f32.mrb[2].mxu0  ;;  %v1420_v33 = vld [vmem:[#allocation5 + $0x1a0] sm:$0xff]  }
 0x1b0   :  { %vm180_vm1 = vcmp.gt.f32.partialorder %v175_v32, 0.0  ;;  %v181_v35 = vmul.f32 0.2, %v175_v32  ;;  %v1216_v36 = vpop.f32.mrb[3].mxu0  ;;  %v1421_v34 = vld [vmem:[#allocation5 + $0x1a8] sm:$0xff]  }
 0x1b2   :  { %v182_v37 = vsel %vm180_vm1, %v175_v32, %v181_v35  ;;  %v1419_v32 = vld [vmem:[#allocation5 + $0x198] sm:$0xff]   ;;  %v1089_v35 = vld [vmem:[#allocation7 + $0x4] ss:$0 sm:$0xff] }
 0x1b3   :  { %v202_v38 = vpack.c.bf16 %v182_v37, %v182_v37 }
 0x1b5   :  { %1234 = vmatmul.mubr.bf16.vlgmr.msra.gmra.mrb[0].mxu1 %v202_v38 }
 0x1b6   :  { %1273 = vmatprep.mubr.msk.bf16.mxu1 %vm1560_vm0, %v1559_v0  ;;  %1258 = vmatpush3.bf16.msra.mxu1 %v1392_v41 }
 0x1b7   :  { %1259 = vmatprep.subr.bf16.mxu1 %v1559_v0 }
 0x1ba   :  { %1260 = vmatpush3.bf16.msra.mxu1 %v1393_v42 }
 0x1bb   :  { %1261 = vmatprep.subr.bf16.mxu1 %v1559_v0 }
 0x1be   :  { %1262 = vmatpush3.bf16.msra.mxu1 %v1394_v43 }
 0x1bf   :  { %1263 = vmatprep.subr.bf16.mxu1 %v1559_v0 }
 0x1c2   :  { %1264 = vmatpush3.bf16.msra.mxu1 %v1395_v44  ;;  %v1422_v44 = vld [vmem:[#allocation5 + $0x1b0] sm:$0xff]  }
 0x1c3   :  { %1265 = vmatprep.subr.bf16.mxu1 %v1559_v0 }
 0x1c6   :  { %1266 = vmatpush3.bf16.msra.mxu1 %v1396_v45  ;;  %v1423_v45 = vld [vmem:[#allocation5 + $0x1b8] sm:$0xff]  }
 0x1c7   :  { %1267 = vmatprep.subr.bf16.mxu1 %v1559_v0 }
 0x1ca   :  { %1268 = vmatpush3.bf16.msra.mxu1 %v1397_v46  ;;  %v1424_v46 = vld [vmem:[#allocation5 + $0x1c0] sm:$0xff]  }
 0x1cb   :  { %1269 = vmatprep.subr.bf16.mxu1 %v1559_v0 }
 0x1ce   :  { %1270 = vmatpush3.bf16.msra.mxu1 %v1398_v56 }
 0x1cf   :  { %1271 = vmatprep.subr.bf16.mxu1 %v1559_v0 }
 0x1d2   :  { %1272 = vmatpush3.bf16.msra.mxu1 %v1399_v57 }
 0x1d3   :  { %1297 = vmatprep.subr.bf16.mxu1 %v1559_v0 }
 0x288   :  { %v291_v48 = vpop.f32.mrb[0].mxu1 }
 0x289   :  { %v292_v49 = vadd.f32 %v1062_v47, %v291_v48  ;;  %v1235_v50 = vpop.f32.mrb[1].mxu1  ;;  %v1425_v47 = vld [vmem:[#allocation5 + $0x1c8] sm:$0xff]   ;;  %v1426_v48 = vld [vmem:[#allocation5 + $0x1d0] sm:$0xff]  }
 0x28a   :  { %v294_v51 = vpop.f32.mrb[2].mxu1  ;;  %v1428_v50 = vld [vmem:[#allocation5 + $0x1e0] sm:$0xff]  }
 0x28b   :  { %vm297_vm2 = vcmp.gt.f32.partialorder %v292_v49, 0.0  ;;  %v298_v52 = vmul.f32 0.2, %v292_v49  ;;  %v1236_v53 = vpop.f32.mrb[3].mxu1  ;;  %v1429_v51 = vld [vmem:[#allocation5 + $0x1e8] sm:$0xff]  }
 0x28d   :  { %v299_v54 = vsel %vm297_vm2, %v292_v49, %v298_v52  ;;  %v1427_v49 = vld [vmem:[#allocation5 + $0x1d8] sm:$0xff]   ;;  %v1098_v52 = vld [vmem:[#allocation7 + $0x5] ss:$0 sm:$0xff] }
 0x28e   :  { %v319_v55 = vpack.c.bf16 %v299_v54, %v299_v54 }
 0x290   :  { %1254 = vmatmul.mubr.bf16.vlgmr.msra.gmra.mrb[4].mxu0 %v319_v55 }
 0x291   :  { %1293 = vmatprep.mubr.msk.bf16.mxu0 %vm1560_vm0, %v1559_v0  ;;  %1278 = vmatpush3.bf16.msra.mxu0 %v1400_v58 }
 0x292   :  { %1279 = vmatprep.subr.bf16.mxu0 %v1559_v0 }
 0x295   :  { %1280 = vmatpush3.bf16.msra.mxu0 %v1401_v59 }
 0x296   :  { %1281 = vmatprep.subr.bf16.mxu0 %v1559_v0 }
 0x299   :  { %1282 = vmatpush3.bf16.msra.mxu0 %v1402_v60 }
 0x29a   :  { %1283 = vmatprep.subr.bf16.mxu0 %v1559_v0 }
 0x29d   :  { %1284 = vmatpush3.bf16.msra.mxu0 %v1403_v61  ;;  %v1430_v61 = vld [vmem:[#allocation5 + $0x1f0] sm:$0xff]  }
 0x29e   :  { %1285 = vmatprep.subr.bf16.mxu0 %v1559_v0 }
 0x2a1   :  { %1286 = vmatpush3.bf16.msra.mxu0 %v1404_v62  ;;  %v1431_v62 = vld [vmem:[#allocation5 + $0x1f8] sm:$0xff]  }
 0x2a2   :  { %1287 = vmatprep.subr.bf16.mxu0 %v1559_v0 }
 0x2a5   :  { %1288 = vmatpush3.bf16.msra.mxu0 %v1405_v63  ;;  %v1107_v63 = vld [vmem:[#allocation7 + $0x6] ss:$0 sm:$0xff] }
 0x2a6   :  { %1289 = vmatprep.subr.bf16.mxu0 %v1559_v0 }
 0x2a9   :  { %1290 = vmatpush3.bf16.msra.mxu0 %v1406_v10 }
 0x2aa   :  { %1291 = vmatprep.subr.bf16.mxu0 %v1559_v0 }
 0x2ad   :  { %1292 = vmatpush3.bf16.msra.mxu0 %v1407_v11 }
 0x2ae   :  { %1317 = vmatprep.subr.bf16.mxu0 %v1559_v0 }
 0x363   :  { %v408_v2 = vpop.f32.mrb[4].mxu0 }
 0x364   :  { %v409_v3 = vadd.f32 %v1071_v1, %v408_v2  ;;  %v1255_v4 = vpop.f32.mrb[5].mxu0 }
 0x365   :  { %v411_v5 = vpop.f32.mrb[6].mxu0 }
 0x366   :  { %vm414_vm3 = vcmp.gt.f32.partialorder %v409_v3, 0.0  ;;  %v415_v6 = vmul.f32 0.2, %v409_v3  ;;  %v1256_v7 = vpop.f32.mrb[7].mxu0 }
 0x368   :  { %v416_v8 = vsel %vm414_vm3, %v409_v3, %v415_v6 }
 0x369   :  { %v436_v9 = vpack.c.bf16 %v416_v8, %v416_v8 }
 0x36b   :  { %1274 = vmatmul.mubr.bf16.vlgmr.msra.gmra.mrb[4].mxu1 %v436_v9  ;;  %v1116_v9 = vld [vmem:[#allocation7 + $0x7] ss:$0 sm:$0xff] }
 0x36c   :  { %1313 = vmatprep.mubr.msk.bf16.mxu1 %vm1560_vm0, %v1559_v0  ;;  %1298 = vmatpush3.bf16.msra.mxu1 %v1408_v12 }
 0x36d   :  { %1299 = vmatprep.subr.bf16.mxu1 %v1559_v0 }
 0x370   :  { %1300 = vmatpush3.bf16.msra.mxu1 %v1409_v13 }
 0x371   :  { %1301 = vmatprep.subr.bf16.mxu1 %v1559_v0 }
 0x374   :  { %1302 = vmatpush3.bf16.msra.mxu1 %v1410_v14 }
 0x375   :  { %1303 = vmatprep.subr.bf16.mxu1 %v1559_v0 }
 0x378   :  { %1304 = vmatpush3.bf16.msra.mxu1 %v1411_v15 }
 0x379   :  { %1305 = vmatprep.subr.bf16.mxu1 %v1559_v0 }
 0x37c   :  { %1306 = vmatpush3.bf16.msra.mxu1 %v1412_v16 }
 0x37d   :  { %1307 = vmatprep.subr.bf16.mxu1 %v1559_v0 }
 0x380   :  { %1308 = vmatpush3.bf16.msra.mxu1 %v1413_v17 }
 0x381   :  { %1309 = vmatprep.subr.bf16.mxu1 %v1559_v0 }
 0x384   :  { %1310 = vmatpush3.bf16.msra.mxu1 %v1414_v27 }
 0x385   :  { %1311 = vmatprep.subr.bf16.mxu1 %v1559_v0 }
 0x388   :  { %1312 = vmatpush3.bf16.msra.mxu1 %v1415_v28 }
 0x389   :  { %1337 = vmatprep.subr.bf16.mxu1 %v1559_v0 }
 0x43e   :  { %v525_v19 = vpop.f32.mrb[4].mxu1 }
 0x43f   :  { %v526_v20 = vadd.f32 %v1080_v18, %v525_v19  ;;  %v1275_v21 = vpop.f32.mrb[5].mxu1 }
 0x440   :  { %v528_v22 = vpop.f32.mrb[6].mxu1 }
 0x441   :  { %vm531_vm4 = vcmp.gt.f32.partialorder %v526_v20, 0.0  ;;  %v532_v23 = vmul.f32 0.2, %v526_v20  ;;  %v1276_v24 = vpop.f32.mrb[7].mxu1  ;;  %v1010_v22 = vld [vmem:[%s1739_s3] sm:$0x1] }
 0x443   :  { %v533_v25 = vsel %vm531_vm4, %v526_v20, %v532_v23  ;;  %v1015_v20 = vlaneseq }
 0x444   :  { %v553_v26 = vpack.c.bf16 %v533_v25, %v533_v25 }
 0x445   :  { %v1016_v24 = vshrl.u32 %v1015_v20, 7 }
 0x446   :  { %1294 = vmatmul.mubr.bf16.vlgmr.msra.gmra.mrb[8].mxu0 %v553_v26  ;;  %v1012_v26 = vmul.f32 0.995, %v1010_v22 }
 0x447   :  { %1333 = vmatprep.mubr.msk.bf16.mxu0 %vm1560_vm0, %v1559_v0  ;;  %1318 = vmatpush3.bf16.msra.mxu0 %v1416_v29  ;;  %v1017_v28 = vsub.s32 0, %v1016_v24 }
 0x448   :  { %1319 = vmatprep.subr.bf16.mxu0 %v1559_v0 }
 0x44b   :  { %1320 = vmatpush3.bf16.msra.mxu0 %v1417_v30 }
 0x44c   :  { %1321 = vmatprep.subr.bf16.mxu0 %v1559_v0 }
 0x44f   :  { %1322 = vmatpush3.bf16.msra.mxu0 %v1418_v31 }
 0x450   :  { %1323 = vmatprep.subr.bf16.mxu0 %v1559_v0 }
 0x453   :  { %1324 = vmatpush3.bf16.msra.mxu0 %v1419_v32 }
 0x454   :  { %1325 = vmatprep.subr.bf16.mxu0 %v1559_v0 }
 0x457   :  { %1326 = vmatpush3.bf16.msra.mxu0 %v1420_v33 }
 0x458   :  { %1327 = vmatprep.subr.bf16.mxu0 %v1559_v0 }
 0x45b   :  { %1328 = vmatpush3.bf16.msra.mxu0 %v1421_v34 }
 0x45c   :  { %1329 = vmatprep.subr.bf16.mxu0 %v1559_v0 }
 0x45f   :  { %1330 = vmatpush3.bf16.msra.mxu0 %v1422_v44 }
 0x460   :  { %1331 = vmatprep.subr.bf16.mxu0 %v1559_v0 }
 0x463   :  { %1332 = vmatpush3.bf16.msra.mxu0 %v1423_v45 }
 0x519   :  { %v642_v36 = vpop.f32.mrb[8].mxu0 }
 0x51a   :  { %v643_v37 = vadd.f32 %v1089_v35, %v642_v36  ;;  %v1295_v38 = vpop.f32.mrb[9].mxu0 }
 0x51b   :  { %v645_v39 = vpop.f32.mrb[10].mxu0 }
 0x51c   :  { %vm648_vm5 = vcmp.gt.f32.partialorder %v643_v37, 0.0  ;;  %v649_v40 = vmul.f32 0.2, %v643_v37  ;;  %v1296_v41 = vpop.f32.mrb[11].mxu0 }
 0x51e   :  { %v650_v42 = vsel %vm648_vm5, %v643_v37, %v649_v40 }
 0x51f   :  { %v670_v43 = vpack.c.bf16 %v650_v42, %v650_v42 }
 0x521   :  { %1314 = vmatmul.mubr.bf16.vlgmr.msra.gmra.mrb[8].mxu1 %v670_v43 }
 0x522   :  { %1353 = vmatprep.mubr.msk.bf16.mxu1 %vm1560_vm0, %v1559_v0  ;;  %1338 = vmatpush3.bf16.msra.mxu1 %v1424_v46 }
 0x523   :  { %1339 = vmatprep.subr.bf16.mxu1 %v1559_v0 }
 0x526   :  { %1340 = vmatpush3.bf16.msra.mxu1 %v1425_v47 }
 0x527   :  { %1341 = vmatprep.subr.bf16.mxu1 %v1559_v0 }
 0x52a   :  { %1342 = vmatpush3.bf16.msra.mxu1 %v1426_v48 }
 0x52b   :  { %1343 = vmatprep.subr.bf16.mxu1 %v1559_v0 }
 0x52e   :  { %1344 = vmatpush3.bf16.msra.mxu1 %v1427_v49 }
 0x52f   :  { %1345 = vmatprep.subr.bf16.mxu1 %v1559_v0 }
 0x532   :  { %1346 = vmatpush3.bf16.msra.mxu1 %v1428_v50 }
 0x533   :  { %1347 = vmatprep.subr.bf16.mxu1 %v1559_v0 }
 0x536   :  { %1348 = vmatpush3.bf16.msra.mxu1 %v1429_v51 }
 0x537   :  { %1349 = vmatprep.subr.bf16.mxu1 %v1559_v0 }
 0x53a   :  { %1350 = vmatpush3.bf16.msra.mxu1 %v1430_v61 }
 0x53b   :  { %1351 = vmatprep.subr.bf16.mxu1 %v1559_v0 }
 0x53e   :  { %1352 = vmatpush3.bf16.msra.mxu1 %v1431_v62 }
 0x5f4   :  { %v759_v53 = vpop.f32.mrb[8].mxu1 }
 0x5f5   :  { %v760_v54 = vadd.f32 %v1098_v52, %v759_v53  ;;  %v1315_v55 = vpop.f32.mrb[9].mxu1 }
 0x5f6   :  { %v762_v56 = vpop.f32.mrb[10].mxu1 }
 0x5f7   :  { %vm765_vm6 = vcmp.gt.f32.partialorder %v760_v54, 0.0  ;;  %v766_v57 = vmul.f32 0.2, %v760_v54  ;;  %v1316_v58 = vpop.f32.mrb[11].mxu1 }
 0x5f9   :  { %v767_v59 = vsel %vm765_vm6, %v760_v54, %v766_v57 }
 0x5fa   :  { %v787_v60 = vpack.c.bf16 %v767_v59, %v767_v59 }
 0x5fc   :  { %1334 = vmatmul.mubr.bf16.vlgmr.msra.gmra.mrb[12].mxu0 %v787_v60 }
 0x6cf   :  { %v876_v1 = vpop.f32.mrb[12].mxu0 }
 0x6d0   :  { %v877_v2 = vadd.f32 %v1107_v63, %v876_v1  ;;  %v1335_v3 = vpop.f32.mrb[13].mxu0 }
 0x6d1   :  { %v879_v4 = vpop.f32.mrb[14].mxu0 }
 0x6d2   :  { %vm882_vm7 = vcmp.gt.f32.partialorder %v877_v2, 0.0  ;;  %v883_v5 = vmul.f32 0.2, %v877_v2  ;;  %v1336_v6 = vpop.f32.mrb[15].mxu0 }
 0x6d4   :  { %v884_v7 = vsel %vm882_vm7, %v877_v2, %v883_v5 }
 0x6d5   :  { %v904_v8 = vpack.c.bf16 %v884_v7, %v884_v7 }
 0x6d7   :  { %1354 = vmatmul.mubr.bf16.vlgmr.msra.gmra.mrb[12].mxu1 %v904_v8 }
 0x7aa   :  { %v993_v10 = vpop.f32.mrb[12].mxu1 }
 0x7ab   :  { %v994_v11 = vadd.f32 %v1116_v9, %v993_v10  ;;  %v1355_v12 = vpop.f32.mrb[13].mxu1 }
 0x7ac   :  { %v996_v13 = vpop.f32.mrb[14].mxu1 }
 0x7ad   :  { %vm999_vm8 = vcmp.gt.f32.partialorder %v994_v11, 0.0  ;;  %v1000_v0 = vmul.f32 0.2, %v994_v11  ;;  %v1356_v14 = vpop.f32.mrb[15].mxu1 }
 0x7af   :  { %v1001_v15 = vsel %vm999_vm8, %v994_v11, %v1000_v0 }
 0x7b0   :  { %v1002_v16 = vrot.slane %v1001_v15, 4 }
 0x7b2   :  { %v1003_v17 = vadd.f32 %v1002_v16, %v1001_v15 }
 0x7b4   :  { %v1004_v18 = vrot.slane %v1003_v17, 2 }
 0x7b6   :  { %v1005_v19 = vadd.f32 %v1004_v18, %v1003_v17 }
 0x7b8   :  { %v1006_v21 = vrot.slane %v1005_v19, 1 }
 0x7ba   :  { %v1007_v23 = vadd.f32 %v1006_v21, %v1005_v19 }
 0x7bc   :  { %v1009_v25 = vmul.f32 0.125, %v1007_v23 }
 0x7be   :  { %v1011_v27 = vmul.f32 0.005, %v1009_v25 }
 0x7c0   :  { %v1013_v29 = vadd.f32 %v1012_v26, %v1011_v27 }
 0x7c2   :  { %v1018_v30 = vrot.slane %v1013_v29, %v1017_v28  ;;  %1014 = vst [vmem:[#allocation9] sm:$0x1] %v1013_v29 }
 0x7c3   :  { %1511 = shalt.err (!%p1508_p0)
}
 0x7c4   :  { %s1512_s12 = scalar_lea.hbm %s1741_s5, 16 }
 0x7c5   :  { %p1513_p1 = scmp.ne.s32.totalorder %s1741_s5, %s1512_s12  ;;  %p1516_p2 = scmp.lt.u32.totalorder %s1512_s12, %s1741_s5 }
 0x7c7   :  { %p1518_p3 = pnand %p1516_p2, %p1513_p1 }
 0x7c9   :  { %1521 = shalt.err (!%p1518_p3)
}
 0x7ca   :  { %1042 = dma.vmem_to_hbm [thread:$0]  %s1040_s8, 16, %s1741_s5, [#allocation10]   ;;  %v1019_v31 = vsub.f32 %v1001_v15, %v1018_v30 }
 0x7cb   :  { %s1562_s18 = smov [#allocation8]  }
 0x7cc   :  { %s1029_s19 = sshll.u32 %s1562_s18, 4  ;;  %v1020_v32 = vmul.f32 0.7, %v1019_v31  ;;  %s1030_s19 = int_to_ptr.vmem [resolvable:$true] %s1029_s19 }
 0x7cd   :  { %s1522_s20 = scalar_lea.vmem %s1030_s19, 128  ;;  %p1527_p5 = scmp.lt.s32.totalorder %s1030_s19, %s1030_s19 }
 0x7ce   :  { %v1021_v33 = vadd.f32 %v1020_v32, %v1018_v30  ;;  %p1523_p4 = scmp.ne.s32.totalorder %s1030_s19, %s1522_s20  ;;  %p1528_p6 = scmp.lt.s32.totalorder %s1522_s20, %s1522_s20 }
 0x7d0   :  { %1022 = vst [vmem:[#allocation8] sm:$0xff] %v1021_v33  ;;  %p1529_p7 = por %p1528_p6, %p1527_p5 }
 0x7d2   :  { %p1530_p8 = pnand %p1529_p7, %p1523_p4 }
 0x7d4   :  { %1533 = shalt.err (!%p1530_p8)
}
 0x7d5   :  { %s1534_s23 = scalar_lea.hbm %s1740_s4, 128 }
 0x7d6   :  { %p1535_p9 = scmp.ne.s32.totalorder %s1740_s4, %s1534_s23  ;;  %p1538_p10 = scmp.lt.u32.totalorder %s1534_s23, %s1740_s4 }
 0x7d8   :  { %p1540_p11 = pnand %p1538_p10, %p1535_p9 }
 0x7da   :  { %1543 = shalt.err (!%p1540_p11)
}
 0x7db   :  { %1032 = dma.vmem_to_hbm [thread:$0]  %s1030_s19, 128, %s1740_s4, [#allocation4]  }
 0x7dc   :  { %1548 = dma.done.wait [#allocation4], 128  }
 0x7dd   :  { %1549 = vsyncadd [#allocation4], 4294967168 }
 0x7de   :  { %1550 = dma.done.wait [#allocation10], 16  }
 0x7df   :  { %1551 = vsyncadd [#allocation10], 4294967280 }
 0x7e0   :  { %1049 = vsyncpa [#allocation3], 1 }
 0x7e1   :  { %1050 = vsyncpa [#allocation6], 1 }
 0x7e2   :  { %1051 = vsyncpa [#allocation4], 1 }
 0x7e3   :  { %1052 = vsyncpa [#allocation10], 1 }

</bundles_post_ra>
